<compile_context>
chip_gen: v5e
topology: v5e:2x2
jax: 0.10.0
libtpu: 0.0.40
codegen_flags: <defaults>
</compile_context>

<pallas_src>
import functools

import jax
import jax.numpy as jnp
from jax.experimental import pallas as pl
from jax.experimental.pallas import tpu as pltpu

_LANES = 128


def xornet_kernel(xt_ref, w1_ref, b1_ref, w2_ref, b2_ref, out_ref,
                  *, input_size, hidden_size):
    """One batch tile of XORNet, fully on VPU/EUP, sublane-dense.

    xt_ref : (input_size, RT, 128) VMEM  -- feature-major x, batch on (rows, lanes)
    w1_ref : (input_size, hidden)  SMEM  -- PyTorch fc1.weight transposed
    b1_ref : (hidden,)             SMEM
    w2_ref : (hidden,)             SMEM  -- PyTorch fc2.weight flattened
    b2_ref : (1,)                  SMEM
    out_ref: (RT, 128) VMEM              -- sublane/lane-dense output slab
    """
    # Fold the fc2 bias into the accumulator init (saves a trailing VALU add).
    z = jnp.full(out_ref.shape, b2_ref[0], jnp.float32)
    for j in range(hidden_size):
        # Hidden pre-activation j: sum_k w1[k, j] * x[k] + b1[j]  (scalar-broadcast MACs).
        acc = xt_ref[0] * w1_ref[0, j]
        for k in range(1, input_size):
            acc = acc + xt_ref[k] * w1_ref[k, j]
        h_j = jnp.tanh(acc + b1_ref[j])          # EUP
        z = z + h_j * w2_ref[j]                  # VPU multiply-add
    # sigmoid(z) = 0.5 * (1 + tanh(z / 2)): exact, one EUP op, no f32 divide.
    out_ref[...] = (0.5 * jnp.tanh(0.5 * z) + 0.5).astype(out_ref.dtype)


def _tile_lanes_and_vmem():
    """Pick a default batch-tile size (in lanes) from physical VMEM capacity."""
    try:
        vmem_bytes = pltpu.get_tpu_info().vmem_capacity_bytes
    except Exception:
        vmem_bytes = 128 * 1024 * 1024
    # Budget ~40-64 B of VMEM per batch lane (double-buffered in/out + temps).
    if vmem_bytes <= 64 * 1024 * 1024:           # v7x: 64 MiB physical
        return 128 * 1024, vmem_bytes
    return 256 * 1024, vmem_bytes                # v5e / v6e: 128 MiB physical


def xornet_forward(x, w1, b1, w2, b2, *, tb=None, x_feature_major=False):
    """XORNet forward. x: (B, input_size) f32 -> (B, 1) f32.

    Weights are stored transposed vs. PyTorch: w1 (input, hidden), w2 (hidden, 1),
    biases b1 (1, hidden), b2 (1, 1).  Pass x_feature_major=True with x of shape
    (input_size, B) to skip the wrapper-side transpose pass entirely.
    """
    if x_feature_major:
        xt = x.astype(jnp.float32)               # (input_size, B)
        input_size, B = xt.shape
    else:
        B, input_size = x.shape
        xt = x.T.astype(jnp.float32)             # (input_size, B)
    hidden_size = w1.shape[1]

    default_tb, vmem_bytes = _tile_lanes_and_vmem()
    if tb is None:
        tb = default_tb
    tb = max(_LANES, (tb // _LANES) * _LANES)

    rows_total = pl.cdiv(B, _LANES)              # batch rows of 128 lanes
    rt_req = tb // _LANES
    if rows_total <= rt_req or rows_total < 8:
        rt = rows_total                          # single full-array block (always legal)
        rows_p = rows_total
    else:
        rt = max(8, (rt_req // 8) * 8)           # keep (rt, 128) blocks (8,128)-aligned
        rows_p = pl.cdiv(rows_total, rt) * rt
    grid = (rows_p // rt,)                       # >= 2 steps for large B (v7x megacore)

    # Pad the lane axis once (only when B isn't already tile-aligned), then take
    # a contiguous, zero-copy sublane-dense view.
    pad = rows_p * _LANES - B
    if pad:
        xt = jnp.pad(xt, ((0, 0), (0, pad)))
    xt3 = xt.reshape(input_size, rows_p, _LANES)

    # VMEM budget: double-buffered in/out blocks + elementwise temps, capped at
    # 75% of the chip's physical VMEM (v7x: 64 MiB, v5e/v6e: 128 MiB).
    vmem_limit = int(min(0.75 * vmem_bytes, max(32 << 20, 128 * rt * _LANES)))

    kernel = functools.partial(
        xornet_kernel, input_size=input_size, hidden_size=hidden_size)
    smem_spec = pl.BlockSpec(memory_space=pltpu.MemorySpace.SMEM)

    out2 = pl.pallas_call(
        kernel,
        out_shape=jax.ShapeDtypeStruct((rows_p, _LANES), jnp.float32),
        grid=grid,
        in_specs=[
            pl.BlockSpec((input_size, rt, _LANES), lambda i: (0, i, 0)),  # pipelined x
            smem_spec,  # w1 resident in SMEM across the grid
            smem_spec,  # b1
            smem_spec,  # w2
            smem_spec,  # b2
        ],
        out_specs=pl.BlockSpec((rt, _LANES), lambda i: (i, 0)),
        compiler_params=pltpu.CompilerParams(
            dimension_semantics=("parallel",),
            vmem_limit_bytes=vmem_limit),
    )(xt3,
      w1.astype(jnp.float32),
      b1.reshape(-1).astype(jnp.float32),
      w2.reshape(-1).astype(jnp.float32),
      b2.reshape(-1).astype(jnp.float32))

    # Keep this slice while lane padding exists (padded tail lanes are garbage).
    return out2.reshape(-1)[:B].reshape(B, 1)


def init_params(key, input_size=2, hidden_size=4):
    """Deterministic init matching nn.Linear shapes (stored transposed)."""
    k1, k2, k3, k4 = jax.random.split(key, 4)
    bound1 = 1.0 / jnp.sqrt(input_size)
    w1 = jax.random.uniform(k1, (input_size, hidden_size), jnp.float32, -bound1, bound1)
    b1 = jax.random.uniform(k2, (1, hidden_size), jnp.float32, -bound1, bound1)
    bound2 = 1.0 / jnp.sqrt(hidden_size)
    w2 = jax.random.uniform(k3, (hidden_size, 1), jnp.float32, -bound2, bound2)
    b2 = jax.random.uniform(k4, (1, 1), jnp.float32, -bound2, bound2)
    return w1, b1, w2, b2


def _reference(x, w1, b1, w2, b2):
    return jax.nn.sigmoid(jnp.tanh(x @ w1 + b1) @ w2 + b2)


if __name__ == "__main__":
    key = jax.random.PRNGKey(0)
    k_params, k_x1, k_x2 = jax.random.split(key, 3)

    input_size, hidden_size = 2, 4
    w1, b1, w2, b2 = init_params(k_params, input_size, hidden_size)

    # --- Small single-block path: batch = 8 (one padded (1, 128) slab) --------
    batch = 8
    x_small = jax.random.uniform(k_x1, (batch, input_size), jnp.float32)
    out_small = jax.block_until_ready(xornet_forward(x_small, w1, b1, w2, b2))
    ref_small = _reference(x_small, w1, b1, w2, b2)
    assert out_small.shape == (batch, 1)
    assert jnp.allclose(out_small, ref_small, atol=1e-4, rtol=1e-4)

    # --- Gridded, sublane-dense path: batch = 2500 -> 20 rows of 128 lanes,
    #     forced tb=1024 (rt=8 rows) -> grid=(3,), (8,128)-aligned blocks ------
    batch_big = 2500
    x_big = jax.random.uniform(k_x2, (batch_big, input_size), jnp.float32)
    out_big = jax.block_until_ready(xornet_forward(x_big, w1, b1, w2, b2, tb=1024))
    ref_big = _reference(x_big, w1, b1, w2, b2)
    assert out_big.shape == (batch_big, 1)
    assert jnp.allclose(out_big, ref_big, atol=1e-4, rtol=1e-4)

    print("KERNEL_OK")
</pallas_src>

<mosaic_0001>
module attributes {stable_mosaic.version = 11 : i64} {
  func.func @xornet_kernel(%arg0: i32, %arg1: memref<2x1x128xf32, #tpu.memory_space<vmem>>, %arg2: memref<2x4xf32, #tpu.memory_space<smem>>, %arg3: memref<4xf32, #tpu.memory_space<smem>>, %arg4: memref<4xf32, #tpu.memory_space<smem>>, %arg5: memref<1xf32, #tpu.memory_space<smem>>, %arg6: memref<1x128xf32, #tpu.memory_space<vmem>>) attributes {dimension_semantics = [#tpu.dimension_semantics<parallel>], iteration_bounds = array<i64: 1>, scalar_prefetch = 0 : i64, scratch_operands = 0 : i64, tpu.core_type = #tpu.core_type<tc>, window_params = [{transform_indices = @transform_0, window_bounds = array<i64: 2, 1, 128>}, {transform_indices = @transform_1, window_bounds = array<i64: 2, 4>}, {transform_indices = @transform_2, window_bounds = array<i64: 4>}, {transform_indices = @transform_3, window_bounds = array<i64: 4>}, {transform_indices = @transform_4, window_bounds = array<i64: 1>}, {transform_indices = @transform_5, window_bounds = array<i64: 1, 128>}]} {
    %c0 = arith.constant 0 : index
    %0 = memref.load %arg5[%c0] : memref<1xf32, #tpu.memory_space<smem>>
    %1 = vector.broadcast %0 : f32 to vector<1x128xf32>
    %c0_0 = arith.constant 0 : index
    %c0_1 = arith.constant 0 : index
    %c0_2 = arith.constant 0 : index
    %2 = vector.load %arg1[%c0_0, %c0_1, %c0_2] : memref<2x1x128xf32, #tpu.memory_space<vmem>>, vector<1x1x128xf32>
    %3 = vector.shape_cast %2 : vector<1x1x128xf32> to vector<1x128xf32>
    %c0_3 = arith.constant 0 : index
    %c0_4 = arith.constant 0 : index
    %4 = memref.load %arg2[%c0_3, %c0_4] : memref<2x4xf32, #tpu.memory_space<smem>>
    %5 = vector.broadcast %4 : f32 to vector<1x128xf32>
    %6 = arith.mulf %3, %5 : vector<1x128xf32>
    %c1 = arith.constant 1 : index
    %c0_5 = arith.constant 0 : index
    %c0_6 = arith.constant 0 : index
    %7 = vector.load %arg1[%c1, %c0_5, %c0_6] : memref<2x1x128xf32, #tpu.memory_space<vmem>>, vector<1x1x128xf32>
    %8 = vector.shape_cast %7 : vector<1x1x128xf32> to vector<1x128xf32>
    %c1_7 = arith.constant 1 : index
    %c0_8 = arith.constant 0 : index
    %9 = memref.load %arg2[%c1_7, %c0_8] : memref<2x4xf32, #tpu.memory_space<smem>>
    %10 = vector.broadcast %9 : f32 to vector<1x128xf32>
    %11 = arith.mulf %8, %10 : vector<1x128xf32>
    %12 = arith.addf %6, %11 : vector<1x128xf32>
    %c0_9 = arith.constant 0 : index
    %13 = memref.load %arg3[%c0_9] : memref<4xf32, #tpu.memory_space<smem>>
    %14 = vector.broadcast %13 : f32 to vector<1x128xf32>
    %15 = arith.addf %12, %14 : vector<1x128xf32>
    %16 = math.tanh %15 : vector<1x128xf32>
    %c0_10 = arith.constant 0 : index
    %17 = memref.load %arg4[%c0_10] : memref<4xf32, #tpu.memory_space<smem>>
    %18 = vector.broadcast %17 : f32 to vector<1x128xf32>
    %19 = arith.mulf %16, %18 : vector<1x128xf32>
    %20 = arith.addf %1, %19 : vector<1x128xf32>
    %c0_11 = arith.constant 0 : index
    %c0_12 = arith.constant 0 : index
    %c0_13 = arith.constant 0 : index
    %21 = vector.load %arg1[%c0_11, %c0_12, %c0_13] : memref<2x1x128xf32, #tpu.memory_space<vmem>>, vector<1x1x128xf32>
    %22 = vector.shape_cast %21 : vector<1x1x128xf32> to vector<1x128xf32>
    %c0_14 = arith.constant 0 : index
    %c1_15 = arith.constant 1 : index
    %23 = memref.load %arg2[%c0_14, %c1_15] : memref<2x4xf32, #tpu.memory_space<smem>>
    %24 = vector.broadcast %23 : f32 to vector<1x128xf32>
    %25 = arith.mulf %22, %24 : vector<1x128xf32>
    %c1_16 = arith.constant 1 : index
    %c0_17 = arith.constant 0 : index
    %c0_18 = arith.constant 0 : index
    %26 = vector.load %arg1[%c1_16, %c0_17, %c0_18] : memref<2x1x128xf32, #tpu.memory_space<vmem>>, vector<1x1x128xf32>
    %27 = vector.shape_cast %26 : vector<1x1x128xf32> to vector<1x128xf32>
    %c1_19 = arith.constant 1 : index
    %c1_20 = arith.constant 1 : index
    %28 = memref.load %arg2[%c1_19, %c1_20] : memref<2x4xf32, #tpu.memory_space<smem>>
    %29 = vector.broadcast %28 : f32 to vector<1x128xf32>
    %30 = arith.mulf %27, %29 : vector<1x128xf32>
    %31 = arith.addf %25, %30 : vector<1x128xf32>
    %c1_21 = arith.constant 1 : index
    %32 = memref.load %arg3[%c1_21] : memref<4xf32, #tpu.memory_space<smem>>
    %33 = vector.broadcast %32 : f32 to vector<1x128xf32>
    %34 = arith.addf %31, %33 : vector<1x128xf32>
    %35 = math.tanh %34 : vector<1x128xf32>
    %c1_22 = arith.constant 1 : index
    %36 = memref.load %arg4[%c1_22] : memref<4xf32, #tpu.memory_space<smem>>
    %37 = vector.broadcast %36 : f32 to vector<1x128xf32>
    %38 = arith.mulf %35, %37 : vector<1x128xf32>
    %39 = arith.addf %20, %38 : vector<1x128xf32>
    %c0_23 = arith.constant 0 : index
    %c0_24 = arith.constant 0 : index
    %c0_25 = arith.constant 0 : index
    %40 = vector.load %arg1[%c0_23, %c0_24, %c0_25] : memref<2x1x128xf32, #tpu.memory_space<vmem>>, vector<1x1x128xf32>
    %41 = vector.shape_cast %40 : vector<1x1x128xf32> to vector<1x128xf32>
    %c0_26 = arith.constant 0 : index
    %c2 = arith.constant 2 : index
    %42 = memref.load %arg2[%c0_26, %c2] : memref<2x4xf32, #tpu.memory_space<smem>>
    %43 = vector.broadcast %42 : f32 to vector<1x128xf32>
    %44 = arith.mulf %41, %43 : vector<1x128xf32>
    %c1_27 = arith.constant 1 : index
    %c0_28 = arith.constant 0 : index
    %c0_29 = arith.constant 0 : index
    %45 = vector.load %arg1[%c1_27, %c0_28, %c0_29] : memref<2x1x128xf32, #tpu.memory_space<vmem>>, vector<1x1x128xf32>
    %46 = vector.shape_cast %45 : vector<1x1x128xf32> to vector<1x128xf32>
    %c1_30 = arith.constant 1 : index
    %c2_31 = arith.constant 2 : index
    %47 = memref.load %arg2[%c1_30, %c2_31] : memref<2x4xf32, #tpu.memory_space<smem>>
    %48 = vector.broadcast %47 : f32 to vector<1x128xf32>
    %49 = arith.mulf %46, %48 : vector<1x128xf32>
    %50 = arith.addf %44, %49 : vector<1x128xf32>
    %c2_32 = arith.constant 2 : index
    %51 = memref.load %arg3[%c2_32] : memref<4xf32, #tpu.memory_space<smem>>
    %52 = vector.broadcast %51 : f32 to vector<1x128xf32>
    %53 = arith.addf %50, %52 : vector<1x128xf32>
    %54 = math.tanh %53 : vector<1x128xf32>
    %c2_33 = arith.constant 2 : index
    %55 = memref.load %arg4[%c2_33] : memref<4xf32, #tpu.memory_space<smem>>
    %56 = vector.broadcast %55 : f32 to vector<1x128xf32>
    %57 = arith.mulf %54, %56 : vector<1x128xf32>
    %58 = arith.addf %39, %57 : vector<1x128xf32>
    %c0_34 = arith.constant 0 : index
    %c0_35 = arith.constant 0 : index
    %c0_36 = arith.constant 0 : index
    %59 = vector.load %arg1[%c0_34, %c0_35, %c0_36] : memref<2x1x128xf32, #tpu.memory_space<vmem>>, vector<1x1x128xf32>
    %60 = vector.shape_cast %59 : vector<1x1x128xf32> to vector<1x128xf32>
    %c0_37 = arith.constant 0 : index
    %c3 = arith.constant 3 : index
    %61 = memref.load %arg2[%c0_37, %c3] : memref<2x4xf32, #tpu.memory_space<smem>>
    %62 = vector.broadcast %61 : f32 to vector<1x128xf32>
    %63 = arith.mulf %60, %62 : vector<1x128xf32>
    %c1_38 = arith.constant 1 : index
    %c0_39 = arith.constant 0 : index
    %c0_40 = arith.constant 0 : index
    %64 = vector.load %arg1[%c1_38, %c0_39, %c0_40] : memref<2x1x128xf32, #tpu.memory_space<vmem>>, vector<1x1x128xf32>
    %65 = vector.shape_cast %64 : vector<1x1x128xf32> to vector<1x128xf32>
    %c1_41 = arith.constant 1 : index
    %c3_42 = arith.constant 3 : index
    %66 = memref.load %arg2[%c1_41, %c3_42] : memref<2x4xf32, #tpu.memory_space<smem>>
    %67 = vector.broadcast %66 : f32 to vector<1x128xf32>
    %68 = arith.mulf %65, %67 : vector<1x128xf32>
    %69 = arith.addf %63, %68 : vector<1x128xf32>
    %c3_43 = arith.constant 3 : index
    %70 = memref.load %arg3[%c3_43] : memref<4xf32, #tpu.memory_space<smem>>
    %71 = vector.broadcast %70 : f32 to vector<1x128xf32>
    %72 = arith.addf %69, %71 : vector<1x128xf32>
    %73 = math.tanh %72 : vector<1x128xf32>
    %c3_44 = arith.constant 3 : index
    %74 = memref.load %arg4[%c3_44] : memref<4xf32, #tpu.memory_space<smem>>
    %75 = vector.broadcast %74 : f32 to vector<1x128xf32>
    %76 = arith.mulf %73, %75 : vector<1x128xf32>
    %77 = arith.addf %58, %76 : vector<1x128xf32>
    %cst = arith.constant 5.000000e-01 : f32
    %78 = vector.broadcast %cst : f32 to vector<1x128xf32>
    %79 = arith.mulf %78, %77 : vector<1x128xf32>
    %80 = math.tanh %79 : vector<1x128xf32>
    %cst_45 = arith.constant 5.000000e-01 : f32
    %81 = vector.broadcast %cst_45 : f32 to vector<1x128xf32>
    %82 = arith.mulf %81, %80 : vector<1x128xf32>
    %cst_46 = arith.constant 5.000000e-01 : f32
    %83 = vector.broadcast %cst_46 : f32 to vector<1x128xf32>
    %84 = arith.addf %82, %83 : vector<1x128xf32>
    %c0_47 = arith.constant 0 : index
    %c0_48 = arith.constant 0 : index
    %85 = vector.load %arg6[%c0_47, %c0_48] : memref<1x128xf32, #tpu.memory_space<vmem>>, vector<1x128xf32>
    tpu.vector_store %arg6[%c0_47, %c0_48], %84 {strides = array<i32>} : memref<1x128xf32, #tpu.memory_space<vmem>>, vector<1x128xf32>,
    return
  }
  func.func @transform_0(%arg0: i32) -> (i32, i32, i32) {
    %c0_i32 = arith.constant 0 : i32
    %c0_i32_0 = arith.constant 0 : i32
    %c0_i32_1 = arith.constant 0 : i32
    return %c0_i32, %arg0, %c0_i32_0 : i32, i32, i32
  }
  func.func @transform_1(%arg0: i32) -> (i32, i32) {
    %c0_i32 = arith.constant 0 : i32
    %c0_i32_0 = arith.constant 0 : i32
    %c0_i32_1 = arith.constant 0 : i32
    return %c0_i32, %c0_i32_0 : i32, i32
  }
  func.func @transform_2(%arg0: i32) -> i32 {
    %c0_i32 = arith.constant 0 : i32
    %c0_i32_0 = arith.constant 0 : i32
    return %c0_i32 : i32
  }
  func.func @transform_3(%arg0: i32) -> i32 {
    %c0_i32 = arith.constant 0 : i32
    %c0_i32_0 = arith.constant 0 : i32
    return %c0_i32 : i32
  }
  func.func @transform_4(%arg0: i32) -> i32 {
    %c0_i32 = arith.constant 0 : i32
    %c0_i32_0 = arith.constant 0 : i32
    return %c0_i32 : i32
  }
  func.func @transform_5(%arg0: i32) -> (i32, i32) {
    %c0_i32 = arith.constant 0 : i32
    %c0_i32_0 = arith.constant 0 : i32
    return %arg0, %c0_i32 : i32, i32
  }
}

</mosaic_0001>

<bundles_post_ra>
// kernel: tpu_custom_call.1
= control target key start
LH: loop header
LB: loop body
LE: loop exit
PB: predicated region body
PF: predicated region fallthrough
CT: control target
= control target key end

     0   :  { %11 = vsyncpa [#allocation5], 0  ;;  %s305_s0 = inlined_call_operand.vmem [shape: f32[2,1,128], index: 0, kind: input, shape index: {}]   ;;  %s306_s1 = inlined_call_operand.hbm [shape: f32[2,4], index: 1, kind: input, shape index: {}]   ;;  %s307_s2 = inlined_call_operand.vmem [shape: f32[4], index: 2, kind: input, shape index: {}]   ;;  %s308_s3 = inlined_call_operand.vmem [shape: f32[4], index: 3, kind: input, shape index: {}]   ;;  %s309_s4 = inlined_call_operand.<no memory space> [shape: f32[1], index: 4, kind: input, shape index: {}]   ;;  %s310_s5 = inlined_call_operand.hbm [shape: f32[1,128], index: 5, kind: output, shape index: {}]  }
   0x1   :  { %12 = vsyncpa [#allocation6], 0 }
   0x2   :  { %13 = vsyncpa [#allocation9], 0 }
   0x3   :  { %14 = vsyncpa [#allocation4], 0  ;;  %s22_s20 = sshll.u32 %s306_s1, 4  ;;  %s31_s23 = sshll.u32 %s307_s2, 4  ;;  %s23_s20 = int_to_ptr.hbm [resolvable:$true] %s22_s20  ;;  %s32_s23 = int_to_ptr.vmem [resolvable:$true] %s31_s23 }
   0x4   :  { %s244_s24 = smov [#allocation3]   ;;  %s245_s25 = smov [#allocation7]  }
   0x5   :  { %25 = dma.hbm_to_smem %s23_s20, 32, %s244_s24, [#allocation5]  }
   0x6   :  { %34 = dma.vmem_to_smem %s32_s23, 16, %s245_s25, [#allocation6]  }
   0x7   :  { %s40_s28 = sshll.u32 %s308_s3, 4  ;;  %s246_s29 = smov [#allocation8]   ;;  %s41_s28 = int_to_ptr.vmem [resolvable:$true] %s40_s28 }
   0x8   :  { %43 = dma.vmem_to_smem %s41_s28, 16, %s246_s29, [#allocation9]  }
   0x9   :  { %236 = dma.done.wait [#allocation5], 32  }
   0xa   :  { %237 = vsyncadd [#allocation5], 4294967264 }
   0xb   :  { %238 = dma.done.wait [#allocation6], 16  }
   0xc   :  { %239 = vsyncadd [#allocation6], 4294967280 }
   0xd   :  { %240 = dma.done.wait [#allocation9], 16  }
   0xe   :  { %241 = vsyncadd [#allocation9], 4294967280 }
   0xf   :  { %58 = sfence }
  0x10   :  { %s62_s1 = sld [smem:[#allocation3]]  ;;  %v61_v0 = vld [vmem:[%s305_s0] sm:$0x1]  ;;  %v148_v1 = vld [vmem:[%s305_s0 + $0x1] sm:$0x1]  ;;  %v60_v27 = vstv %s309_s4  ;;  %s247_s4 = smov [#allocation10]  }
  0x11   :  { %s149_s2 = sld [smem:[#allocation3 + $0x80]]  ;;  %s134_s23 = sshll.u32 %s247_s4, 4  ;;  %s135_s23 = int_to_ptr.vmem [resolvable:$true] %s134_s23 }
  0x12   :  { %s71_s30 = sld [smem:[#allocation7]]  ;;  %s136_s26 = sshll.u32 %s310_s5, 4  ;;  %s137_s26 = int_to_ptr.hbm [resolvable:$true] %s136_s26 }
  0x13   :  { %s150_s8 = sld [smem:[#allocation3 + $0x1]] }
  0x14   :  { %s151_s10 = sld [smem:[#allocation3 + $0x81]] }
  0x15   :  { %s152_s11 = sld [smem:[#allocation7 + $0x1]] }
  0x16   :  { %v63_v2 = vstv %s62_s1  ;;  %s293_s12 = sld [smem:[#allocation8]] }
  0x17   :  { %v64_v3 = vmul.f32 %v63_v2, %v61_v0  ;;  %v68_v4 = vstv %s149_s2  ;;  %s154_s13 = sld [smem:[#allocation3 + $0x2]] }
  0x18   :  { %v69_v5 = vmul.f32 %v148_v1, %v68_v4  ;;  %v72_v6 = vstv %s71_s30  ;;  %s155_s14 = sld [smem:[#allocation3 + $0x82]] }
  0x19   :  { %v80_v8 = vstv %s150_s8  ;;  %s156_s15 = sld [smem:[#allocation7 + $0x2]] }
  0x1a   :  { %v70_v7 = vadd.f32 %v69_v5, %v64_v3  ;;  %v81_v9 = vmul.f32 %v80_v8, %v61_v0  ;;  %v83_v10 = vstv %s151_s10  ;;  %s295_s16 = sld [smem:[#allocation8 + $0x1]] }
  0x1b   :  { %v84_v12 = vmul.f32 %v148_v1, %v83_v10  ;;  %s158_s0 = sld [smem:[#allocation3 + $0x3]]  ;;  %v87_v13 = vstv %s152_s11 }
  0x1c   :  { %v73_v11 = vadd.f32 %v72_v6, %v70_v7  ;;  %s159_s17 = sld [smem:[#allocation3 + $0x83]]  ;;  %v76_v21 = vstv %s293_s12 }
  0x1d   :  { %v85_v14 = vadd.f32 %v84_v12, %v81_v9  ;;  %v95_v15 = vstv %s154_s13  ;;  %s160_s18 = sld [smem:[#allocation7 + $0x3]] }
  0x1e   :  { %166 = vtanh.f32 %v73_v11  ;;  %v96_v16 = vmul.f32 %v95_v15, %v61_v0  ;;  %v98_v17 = vstv %s155_s14  ;;  %s157_s19 = sld [smem:[#allocation8 + $0x2]] }
  0x1f   :  { %v88_v18 = vadd.f32 %v87_v13, %v85_v14  ;;  %v99_v19 = vmul.f32 %v148_v1, %v98_v17  ;;  %v102_v20 = vstv %s156_s15  ;;  %s161_s22 = sld [smem:[#allocation8 + $0x3]] }
  0x20   :  { %v91_v32 = vstv %s295_s16 }
  0x21   :  { %168 = vtanh.f32 %v88_v18  ;;  %v100_v22 = vadd.f32 %v99_v19, %v96_v16  ;;  %v110_v23 = vstv %s158_s0 }
  0x22   :  { %v111_v24 = vmul.f32 %v110_v23, %v61_v0  ;;  %v113_v25 = vstv %s159_s17 }
  0x23   :  { %v103_v28 = vadd.f32 %v102_v20, %v100_v22  ;;  %v114_v29 = vmul.f32 %v148_v1, %v113_v25  ;;  %v117_v31 = vstv %s160_s18 }
  0x24   :  { %v167_v26 = vpop.eup %166  ;;  %v106_v38 = vstv %s157_s19 }
  0x25   :  { %v77_v30 = vmul.f32 %v167_v26, %v76_v21  ;;  %170 = vtanh.f32 %v103_v28  ;;  %v115_v33 = vadd.f32 %v114_v29, %v111_v24  ;;  %v121_v42 = vstv %s161_s22 }
  0x27   :  { %v78_v34 = vadd.f32 %v77_v30, %v60_v27  ;;  %v169_v35 = vpop.eup %168  ;;  %v118_v36 = vadd.f32 %v117_v31, %v115_v33 }
  0x28   :  { %v92_v37 = vmul.f32 %v169_v35, %v91_v32 }
  0x29   :  { %172 = vtanh.f32 %v118_v36 }
  0x2a   :  { %v93_v39 = vadd.f32 %v92_v37, %v78_v34 }
  0x2b   :  { %v171_v40 = vpop.eup %170 }
  0x2c   :  { %v107_v41 = vmul.f32 %v171_v40, %v106_v38 }
  0x2e   :  { %v108_v43 = vadd.f32 %v107_v41, %v93_v39 }
  0x2f   :  { %v173_v44 = vpop.eup %172 }
  0x30   :  { %v122_v45 = vmul.f32 %v173_v44, %v121_v42 }
  0x32   :  { %v123_v46 = vadd.f32 %v122_v45, %v108_v43 }
  0x34   :  { %v124_v47 = vmul.f32 0.5, %v123_v46 }
  0x36   :  { %174 = vtanh.f32 %v124_v47 }
  0x3c   :  { %v175_v48 = vpop.eup %174 }
  0x3d   :  { %v126_v49 = vmul.f32 0.5, %v175_v48 }
  0x3f   :  { %v127_v50 = vadd.f32 0.5, %v126_v49 }
  0x41   :  { %128 = vst [vmem:[#allocation10] sm:$0x1] %v127_v50 }
  0x42   :  { %139 = dma.vmem_to_hbm [thread:$0]  %s135_s23, 16, %s137_s26, [#allocation4]  }
  0x43   :  { %242 = dma.done.wait [#allocation4], 16  }
  0x44   :  { %243 = vsyncadd [#allocation4], 4294967280 }
  0x45   :  { %144 = vsyncpa [#allocation4], 1 }
  0x46   :  { %145 = vsyncpa [#allocation5], 1 }
  0x47   :  { %146 = vsyncpa [#allocation6], 1 }
  0x48   :  { %147 = vsyncpa [#allocation9], 1 }

</bundles_post_ra>
